<compile_context>
chip_gen: v7x
topology: tpu7x:2x2x1
jax: 0.10.0
libtpu: 0.0.40
codegen_flags: <defaults>
</compile_context>

<pallas_src>
import functools

import jax
import jax.numpy as jnp
from jax.experimental import pallas as pl
from jax.experimental.pallas import tpu as pltpu

IP_SIZE = 200
HID_SIZE = 32
OP_SIZE = 1

# Per-tile VMEM footprint at TB rows (lane padding included):
#   x   : 2 buffers * TB * 256 lanes * itemsize      (200 features pad to 256 lanes)
#   out : 2 buffers * TB * 128 lanes * 4 B           ((TB,1) block pads to (TB,128))
#   W1  : 2 buffers * 200 * 128 lanes * itemsize     (tiny)
# TB=8192 f32 ~= 24.3 MiB, bf16 ~= 16.3 MiB — explicit vmem_limit_bytes below.
DEFAULT_BLOCK_B = 8192


def _round_up(n, m):
    return ((n + m - 1) // m) * m


def _choose_tb(batch, block_b):
    """Tile rows: cap at block_b, keep a multiple of 8, and guarantee >= 2 grid
    steps (v7x megacore) whenever the batch can be split into >= 8-row halves."""
    tb = min(block_b, _round_up(batch, 8))
    if batch >= 16:
        half = _round_up(pl.cdiv(batch, 2), 8)
        tb = min(tb, half)
    return max(tb, 8)


def _vmem_limit_bytes(tb, x_itemsize):
    x_bytes = 2 * tb * 256 * x_itemsize            # streamed x, double-buffered
    out_bytes = 2 * tb * 128 * 4                   # (tb,1) output block pads to 128 lanes
    w_bytes = 2 * (IP_SIZE * 128 * x_itemsize + 3 * 128 * 4)   # W1 + b1 + w2 column
    needed = x_bytes + out_bytes + w_bytes
    return max(int(needed * 1.25) + (1 << 20), 32 << 20)


def mlp_kernel(x_ref, w1t_ref, b1_ref, w2c_ref, b2_ref, o_ref):
    # Layer 1 on the MXU: (TB, 200) @ (200, 32), f32 accumulation.
    h = jnp.dot(x_ref[...], w1t_ref[...], preferred_element_type=jnp.float32)
    h = jax.nn.sigmoid(h + b1_ref[...])
    # Layer 2 also on the MXU (N=1 matmul is free; keeps the XLU out of the loop).
    y = jnp.dot(h, w2c_ref[...], preferred_element_type=jnp.float32) + b2_ref[0, 0]
    o_ref[...] = jax.nn.sigmoid(y).astype(o_ref.dtype)


def prepare_params(w1, b1, w2, b2, *, x_dtype=jnp.float32):
    """One-time parameter preprocessing (hoisted out of the per-call path).

    x_dtype=jnp.bfloat16 halves the HBM traffic of the streamed activations and W1
    and is recommended on ALL generations (v5e/v6e/v7x): the MXU takes bf16
    natively everywhere and all accumulation / bias / sigmoid math stays f32, so
    v5e's lack of bf16 VPU is irrelevant.  The producer must then emit x in bf16.
    """
    w1t = jnp.asarray(w1, x_dtype).T                                   # (200, 32)
    b1r = jnp.asarray(b1, jnp.float32).reshape(1, HID_SIZE)            # (1, 32)
    w2c = jnp.asarray(w2, jnp.float32).reshape(HID_SIZE, OP_SIZE)      # (32, 1) MXU column
    b2s = jnp.asarray(b2, jnp.float32).reshape(1, 1)                   # (1, 1) SMEM scalar
    return w1t, b1r, w2c, b2s


@functools.partial(jax.jit, static_argnames=("block_b",))
def custom_network_forward(x, params, block_b=DEFAULT_BLOCK_B):
    """x: (B, 200); params from prepare_params(). Returns (B, 1) f32."""
    w1t, b1r, w2c, b2s = params
    if x.dtype != w1t.dtype:
        # Never cast x here: a full bf16 copy of x in HBM would cancel the bandwidth
        # saving the bf16 path exists for.  Cast the tiny (200,32) W1 instead.
        w1t = w1t.astype(x.dtype)

    B = x.shape[0]
    tb = _choose_tb(B, block_b)
    grid_b = pl.cdiv(B, tb)
    itemsize = jnp.dtype(x.dtype).itemsize

    cost = pl.CostEstimate(
        flops=2 * B * IP_SIZE * HID_SIZE + 2 * B * HID_SIZE * OP_SIZE,
        transcendentals=B * (HID_SIZE + OP_SIZE),
        bytes_accessed=B * IP_SIZE * itemsize + B * OP_SIZE * 4
        + IP_SIZE * HID_SIZE * itemsize + (2 * HID_SIZE + 2) * 4,
    )

    return pl.pallas_call(
        mlp_kernel,
        out_shape=jax.ShapeDtypeStruct((B, OP_SIZE), jnp.float32),
        grid=(grid_b,),
        in_specs=[
            # x: streamed batch tiles, double-buffered by the Pallas pipeline.
            # (Bump to pipeline_mode=pl.Buffered(3) only if a trace shows exposed DMA.)
            pl.BlockSpec((tb, IP_SIZE), lambda i: (i, 0)),
            # Weights / bias row / W2 column: resident, same block every step.
            pl.BlockSpec((IP_SIZE, HID_SIZE), lambda i: (0, 0)),
            pl.BlockSpec((1, HID_SIZE), lambda i: (0, 0)),
            pl.BlockSpec((HID_SIZE, OP_SIZE), lambda i: (0, 0)),
            # b2: scalar in SMEM.
            pl.BlockSpec(memory_space=pltpu.MemorySpace.SMEM),
        ],
        out_specs=pl.BlockSpec((tb, OP_SIZE), lambda i: (i, 0)),
        compiler_params=pltpu.CompilerParams(
            # Batch axis is embarrassingly parallel -> shards across v7x's 2 TCs.
            dimension_semantics=("parallel",),
            vmem_limit_bytes=_vmem_limit_bytes(tb, itemsize),
        ),
        cost_estimate=cost,
    )(x, w1t, b1r, w2c, b2s)


def init_params(key):
    """Deterministic init mimicking nn.Linear default (uniform +- 1/sqrt(fan_in))."""
    k1, k2, k3, k4 = jax.random.split(key, 4)
    bound1 = 1.0 / jnp.sqrt(IP_SIZE)
    bound2 = 1.0 / jnp.sqrt(HID_SIZE)
    w1 = jax.random.uniform(k1, (HID_SIZE, IP_SIZE), jnp.float32, -bound1, bound1)
    b1 = jax.random.uniform(k2, (HID_SIZE,), jnp.float32, -bound1, bound1)
    w2 = jax.random.uniform(k3, (OP_SIZE, HID_SIZE), jnp.float32, -bound2, bound2)
    b2 = jax.random.uniform(k4, (OP_SIZE,), jnp.float32, -bound2, bound2)
    return w1, b1, w2, b2


def _ref_forward(x, w1, b1, w2, b2):
    return jax.nn.sigmoid(jax.nn.sigmoid(x @ w1.T + b1) @ w2.T + b2)


if __name__ == "__main__":
    key = jax.random.PRNGKey(0)
    kx, kp = jax.random.split(key)
    w1, b1, w2, b2 = init_params(kp)

    # ---- f32 path: single tile (B=8), multi-tile (B=256, >=2 grid steps), and a
    #      partial last tile (B=100 with 56-row tiles) ----
    params_f32 = prepare_params(w1, b1, w2, b2)
    for B, blk in ((8, 128), (256, 128), (100, 64)):
        x = jax.random.normal(jax.random.fold_in(kx, B), (B, IP_SIZE), jnp.float32)
        out = jax.block_until_ready(custom_network_forward(x, params_f32, block_b=blk))
        ref = _ref_forward(x, w1, b1, w2, b2)
        assert out.shape == (B, OP_SIZE)
        assert jnp.allclose(out, ref, atol=1e-5, rtol=1e-5), f"f32 mismatch at B={B}"

    # ---- bf16 streaming path (recommended on all gens); producer emits bf16 x ----
    params_bf16 = prepare_params(w1, b1, w2, b2, x_dtype=jnp.bfloat16)
    B = 256
    x = jax.random.normal(kx, (B, IP_SIZE), jnp.float32)
    x_bf16 = x.astype(jnp.bfloat16)  # producer-side cast, NOT inside the forward
    out = jax.block_until_ready(custom_network_forward(x_bf16, params_bf16, block_b=128))
    ref = _ref_forward(x, w1, b1, w2, b2)
    assert out.shape == (B, OP_SIZE)
    assert jnp.allclose(out, ref, atol=2e-2, rtol=2e-2), "bf16 mismatch"

    # ---- mixed dtype: f32 x with bf16-prepared params falls back to casting the
    #      tiny W1 (no HBM copy of x) ----
    out = jax.block_until_ready(custom_network_forward(x, params_bf16, block_b=128))
    assert jnp.allclose(out, ref, atol=2e-2, rtol=2e-2), "mixed-dtype mismatch"

    print("KERNEL_OK")
</pallas_src>

<mosaic_0001>
module attributes {stable_mosaic.version = 11 : i64} {
  func.func @mlp_kernel(%arg0: i32, %arg1: memref<8x200xf32, #tpu.memory_space<vmem>>, %arg2: memref<200x32xf32, #tpu.memory_space<vmem>>, %arg3: memref<1x32xf32, #tpu.memory_space<vmem>>, %arg4: memref<32x1xf32, #tpu.memory_space<vmem>>, %arg5: memref<1x1xf32, #tpu.memory_space<smem>>, %arg6: memref<8x1xf32, #tpu.memory_space<vmem>>) attributes {dimension_semantics = [#tpu.dimension_semantics<parallel>], iteration_bounds = array<i64: 1>, scalar_prefetch = 0 : i64, scratch_operands = 0 : i64, tpu.core_type = #tpu.core_type<tc>, window_params = [{transform_indices = @transform_0, window_bounds = array<i64: 8, 200>}, {pipeline_mode = #tpu.pipeline_mode<synchronous>, transform_indices = @transform_1, window_bounds = array<i64: 200, 32>}, {pipeline_mode = #tpu.pipeline_mode<synchronous>, transform_indices = @transform_2, window_bounds = array<i64: 1, 32>}, {pipeline_mode = #tpu.pipeline_mode<synchronous>, transform_indices = @transform_3, window_bounds = array<i64: 32, 1>}, {transform_indices = @transform_4, window_bounds = array<i64: 1, 1>}, {transform_indices = @transform_5, window_bounds = array<i64: 8, 1>}]} {
    %c0 = arith.constant 0 : index
    %c0_0 = arith.constant 0 : index
    %0 = vector.load %arg1[%c0, %c0_0] : memref<8x200xf32, #tpu.memory_space<vmem>>, vector<8x200xf32>
    %c0_1 = arith.constant 0 : index
    %c0_2 = arith.constant 0 : index
    %1 = vector.load %arg2[%c0_1, %c0_2] : memref<200x32xf32, #tpu.memory_space<vmem>>, vector<200x32xf32>
    %cst = arith.constant dense<0.000000e+00> : vector<8x32xf32>
    %2 = tpu.matmul %0, %1, %cst {dimension_numbers = #tpu.dot_dimension_numbers<[1], [0], [0], [1], [0, 0, 1, 1], [], []>} : vector<8x200xf32>, vector<200x32xf32>, vector<8x32xf32> -> vector<8x32xf32>
    %c0_3 = arith.constant 0 : index
    %c0_4 = arith.constant 0 : index
    %3 = vector.load %arg3[%c0_3, %c0_4] : memref<1x32xf32, #tpu.memory_space<vmem>>, vector<1x32xf32>
    %4 = vector.broadcast %3 : vector<1x32xf32> to vector<8x32xf32>
    %5 = arith.addf %2, %4 : vector<8x32xf32>
    %6 = arith.negf %5 : vector<8x32xf32>
    %7 = math.exp %6 : vector<8x32xf32>
    %cst_5 = arith.constant 1.000000e+00 : f32
    %8 = vector.broadcast %cst_5 : f32 to vector<8x32xf32>
    %9 = arith.addf %8, %7 : vector<8x32xf32>
    %10 = arith.divf %8, %9 : vector<8x32xf32>
    %c0_6 = arith.constant 0 : index
    %c0_7 = arith.constant 0 : index
    %11 = vector.load %arg4[%c0_6, %c0_7] : memref<32x1xf32, #tpu.memory_space<vmem>>, vector<32x1xf32>
    %cst_8 = arith.constant dense<0.000000e+00> : vector<8x1xf32>
    %12 = tpu.matmul %10, %11, %cst_8 {dimension_numbers = #tpu.dot_dimension_numbers<[1], [0], [0], [1], [0, 0, 1, 1], [], []>} : vector<8x32xf32>, vector<32x1xf32>, vector<8x1xf32> -> vector<8x1xf32>
    %c0_9 = arith.constant 0 : index
    %c0_10 = arith.constant 0 : index
    %13 = memref.load %arg5[%c0_9, %c0_10] : memref<1x1xf32, #tpu.memory_space<smem>>
    %14 = vector.broadcast %13 : f32 to vector<8x1xf32>
    %15 = arith.addf %12, %14 : vector<8x1xf32>
    %16 = arith.negf %15 : vector<8x1xf32>
    %17 = math.exp %16 : vector<8x1xf32>
    %cst_11 = arith.constant 1.000000e+00 : f32
    %18 = vector.broadcast %cst_11 : f32 to vector<8x1xf32>
    %19 = arith.addf %18, %17 : vector<8x1xf32>
    %20 = arith.divf %18, %19 : vector<8x1xf32>
    %c0_12 = arith.constant 0 : index
    %c0_13 = arith.constant 0 : index
    %21 = vector.load %arg6[%c0_12, %c0_13] : memref<8x1xf32, #tpu.memory_space<vmem>>, vector<8x1xf32>
    tpu.vector_store %arg6[%c0_12, %c0_13], %20 {strides = array<i32>} : memref<8x1xf32, #tpu.memory_space<vmem>>, vector<8x1xf32>,
    return
  }
  func.func @transform_0(%arg0: i32) -> (i32, i32) {
    %c0_i32 = arith.constant 0 : i32
    %c0_i32_0 = arith.constant 0 : i32
    return %arg0, %c0_i32 : i32, i32
  }
  func.func @transform_1(%arg0: i32) -> (i32, i32) {
    %c0_i32 = arith.constant 0 : i32
    %c0_i32_0 = arith.constant 0 : i32
    %c0_i32_1 = arith.constant 0 : i32
    return %c0_i32, %c0_i32_0 : i32, i32
  }
  func.func @transform_2(%arg0: i32) -> (i32, i32) {
    %c0_i32 = arith.constant 0 : i32
    %c0_i32_0 = arith.constant 0 : i32
    %c0_i32_1 = arith.constant 0 : i32
    return %c0_i32, %c0_i32_0 : i32, i32
  }
  func.func @transform_3(%arg0: i32) -> (i32, i32) {
    %c0_i32 = arith.constant 0 : i32
    %c0_i32_0 = arith.constant 0 : i32
    %c0_i32_1 = arith.constant 0 : i32
    return %c0_i32, %c0_i32_0 : i32, i32
  }
  func.func @transform_4(%arg0: i32) -> (i32, i32) {
    %c0_i32 = arith.constant 0 : i32
    %c0_i32_0 = arith.constant 0 : i32
    %c0_i32_1 = arith.constant 0 : i32
    return %c0_i32, %c0_i32_0 : i32, i32
  }
  func.func @transform_5(%arg0: i32) -> (i32, i32) {
    %c0_i32 = arith.constant 0 : i32
    %c0_i32_0 = arith.constant 0 : i32
    return %arg0, %c0_i32 : i32, i32
  }
}

</mosaic_0001>

<bundles_post_ra>
// kernel: custom_network_forward.1
= control target key start
LH: loop header
LB: loop body
LE: loop exit
PB: predicated region body
PF: predicated region fallthrough
CT: control target
= control target key end

     0   :  { %v301_v0 = vmov 0.0|0.0   ;;  %vm55_vm0 = vcmask 588800   ;;  %v302_v38 = vmov 0.0   ;;  %vm303_vm1 = vmmov 0   ;;  %s450_s1 = inlined_call_operand.vmem [shape: f32[200,32], index: 1, kind: input, shape index: {}]   ;;  %s451_s0 = inlined_call_operand.vmem [shape: f32[8,200], index: 0, kind: input, shape index: {}]   ;;  %s452_s3 = inlined_call_operand.vmem [shape: f32[32,1], index: 3, kind: input, shape index: {}]   ;;  %s453_s2 = inlined_call_operand.vmem [shape: f32[1,32], index: 2, kind: input, shape index: {}]   ;;  %s454_s4 = inlined_call_operand.<no memory space> [shape: f32[1,1], index: 4, kind: input, shape index: {}]   ;;  %s455_s5 = inlined_call_operand.vmem [shape: f32[8,1], index: 5, kind: output, shape index: {}]  }
   0x1   :  { %248 = vmatprep.subr.bf16.mxu0 %v301_v0  ;;  %v23_v1 = vld [vmem:[%s450_s1] sm:$0xff]  ;;  %v24_v2 = vld [vmem:[%s450_s1 + $0x8] sm:$0xff]  ;;  %v25_v3 = vld [vmem:[%s450_s1 + $0x10] sm:$0xff]  ;;  %284 = vmatprep.subr.bf16.mxu1 %v301_v0  ;;  %vm141_vm2 = vcmask 261120   ;;  %v140_v55 = vstv %s454_s4  ;;  %vm221_vm3 = vcmask 7168  }
   0x2   :  { %v249_v4 = vpack.c.bf16 %v24_v2, %v23_v1  ;;  %v26_v5 = vld [vmem:[%s450_s1 + $0x18] sm:$0xff]  ;;  %v27_v7 = vld [vmem:[%s450_s1 + $0x20] sm:$0xff]  ;;  %v28_v8 = vld [vmem:[%s450_s1 + $0x28] sm:$0xff]  ;;  %245 = vmatprep.mubr.msk.f32.mxu1 %vm303_vm1, %v302_v38 }
   0x3   :  { %v252_v6 = vpack.c.bf16 %v26_v5, %v25_v3  ;;  %v255_v9 = vpack.c.bf16 %v28_v8, %v27_v7  ;;  %v29_v10 = vld [vmem:[%s450_s1 + $0x30] sm:$0xff]  ;;  %v30_v11 = vld [vmem:[%s450_s1 + $0x38] sm:$0xff]  ;;  %v22_v12 = vld [vmem:[%s451_s0 + $0x8] sm:$0xff] }
   0x4   :  { %250 = vmatpush1.bf16.msra.mxu0 %v249_v4  ;;  %228 = vmatprep.mubr.msk.f32.mxu0 %vm55_vm0, %v22_v12  ;;  %v258_v13 = vpack.c.bf16 %v30_v11, %v29_v10  ;;  %v31_v14 = vld [vmem:[%s450_s1 + $0x40] sm:$0xff]  ;;  %v32_v15 = vld [vmem:[%s450_s1 + $0x48] sm:$0xff]  ;;  %v33_v17 = vld [vmem:[%s450_s1 + $0x50] sm:$0xff] }
   0x5   :  { %251 = vmatprep.subr.bf16.mxu0 %v301_v0  ;;  %v261_v16 = vpack.c.bf16 %v32_v15, %v31_v14  ;;  %v34_v18 = vld [vmem:[%s450_s1 + $0x58] sm:$0xff]  ;;  %v35_v20 = vld [vmem:[%s450_s1 + $0x60] sm:$0xff]  ;;  %v36_v21 = vld [vmem:[%s450_s1 + $0x68] sm:$0xff] }
   0x6   :  { %v264_v19 = vpack.c.bf16 %v34_v18, %v33_v17  ;;  %v267_v22 = vpack.c.bf16 %v36_v21, %v35_v20  ;;  %v37_v23 = vld [vmem:[%s450_s1 + $0x70] sm:$0xff]  ;;  %v38_v24 = vld [vmem:[%s450_s1 + $0x78] sm:$0xff]  ;;  %v39_v26 = vld [vmem:[%s450_s1 + $0x80] sm:$0xff] }
   0x7   :  { %v270_v25 = vpack.c.bf16 %v38_v24, %v37_v23  ;;  %v40_v27 = vld [vmem:[%s450_s1 + $0x88] sm:$0xff]  ;;  %v41_v29 = vld [vmem:[%s450_s1 + $0x90] sm:$0xff]  ;;  %v42_v30 = vld [vmem:[%s450_s1 + $0x98] sm:$0xff] }
   0x8   :  { %253 = vmatpush1.bf16.msra.mxu0 %v252_v6  ;;  %v273_v28 = vpack.c.bf16 %v40_v27, %v39_v26  ;;  %v276_v31 = vpack.c.bf16 %v42_v30, %v41_v29  ;;  %v43_v32 = vld [vmem:[%s450_s1 + $0xa0] sm:$0xff]  ;;  %v44_v33 = vld [vmem:[%s450_s1 + $0xa8] sm:$0xff]  ;;  %v45_v35 = vld [vmem:[%s450_s1 + $0xb0] sm:$0xff] }
   0x9   :  { %254 = vmatprep.subr.bf16.mxu0 %v301_v0  ;;  %v279_v34 = vpack.c.bf16 %v44_v33, %v43_v32  ;;  %v46_v36 = vld [vmem:[%s450_s1 + $0xb8] sm:$0xff]  ;;  %v47_v39 = vld [vmem:[%s450_s1 + $0xc0] sm:$0xff]  ;;  %v136_v42 = vld [vmem:[%s452_s3 + $0x8] sm:$0xff] }
   0xa   :  { %v282_v37 = vpack.c.bf16 %v46_v36, %v45_v35  ;;  %v21_v40 = vld [vmem:[%s451_s0] sm:$0xff]  ;;  %v137_v43 = vld [vmem:[%s452_s3 + $0x10] sm:$0xff]  ;;  %v138_v45 = vld [vmem:[%s452_s3 + $0x18] sm:$0xff] }
   0xb   :  { %v135_v41 = vld [vmem:[%s452_s3] sm:$0xff]  ;;  %v288_v46 = vpack.c.bf16 %v138_v45, %v137_v43 }
   0xc   :  { %256 = vmatpush1.bf16.msra.mxu0 %v255_v9  ;;  %v285_v44 = vpack.c.bf16 %v136_v42, %v135_v41  ;;  %v227_v47 = vld [vmem:[%s453_s2] ss:$0 sm:$0xff] }
   0xd   :  { %257 = vmatprep.subr.bf16.mxu0 %v301_v0 }
   0xe   :  { %286 = vmatpush3.bf16.msra.mxu1 %v285_v44 }
   0xf   :  { %287 = vmatprep.subr.bf16.mxu1 %v301_v0 }
  0x10   :  { %259 = vmatpush1.bf16.msra.mxu0 %v258_v13 }
  0x11   :  { %260 = vmatprep.subr.bf16.mxu0 %v301_v0 }
  0x12   :  { %289 = vmatpush3.bf16.msra.mxu1 %v288_v46 }
  0x14   :  { %262 = vmatpush1.bf16.msra.mxu0 %v261_v16 }
  0x15   :  { %263 = vmatprep.subr.bf16.mxu0 %v301_v0 }
  0x18   :  { %265 = vmatpush1.bf16.msra.mxu0 %v264_v19 }
  0x19   :  { %266 = vmatprep.subr.bf16.mxu0 %v301_v0 }
  0x1c   :  { %268 = vmatpush1.bf16.msra.mxu0 %v267_v22 }
  0x1d   :  { %269 = vmatprep.subr.bf16.mxu0 %v301_v0 }
  0x20   :  { %271 = vmatpush1.bf16.msra.mxu0 %v270_v25 }
  0x21   :  { %272 = vmatprep.subr.bf16.mxu0 %v301_v0 }
  0x24   :  { %274 = vmatpush1.bf16.msra.mxu0 %v273_v28 }
  0x25   :  { %275 = vmatprep.subr.bf16.mxu0 %v301_v0 }
  0x28   :  { %277 = vmatpush1.bf16.msra.mxu0 %v276_v31 }
  0x29   :  { %278 = vmatprep.subr.bf16.mxu0 %v301_v0 }
  0x2c   :  { %280 = vmatpush1.bf16.msra.mxu0 %v279_v34 }
  0x2d   :  { %281 = vmatprep.subr.bf16.mxu0 %v301_v0 }
  0x30   :  { %283 = vmatpush1.bf16.msra.mxu0 %v282_v37 }
  0x31   :  { %107 = vmatprep.subr.mxu0 %v302_v38 }
  0x34   :  { %108 = vmatpush1.msra.mxu0 %v47_v39 }
  0x35   :  { %124 = vmatmul.mubr.f32.vlgmr.msra.gmra.mrb[0].mxu0 %v21_v40 }
 0x108   :  { %v125_v48 = vpop.f32.mrb[0].mxu0 }
 0x109   :  { %v126_v49 = vadd.f32 %v227_v47, %v125_v48  ;;  %v127_v50 = vpop.f32.mrb[1].mxu0 }
 0x10b   :  { %v229_v51 = vmul.f32 -1.442695, %v126_v49 }
 0x10d   :  { %293 = vpow2.f32 %v229_v51 }
 0x117   :  { %v294_v52 = vpop.eup %293 }
 0x118   :  { %v132_v53 = vadd.f32 1.0, %v294_v52 }
 0x11a   :  { %295 = vrcp.f32 %v132_v53 }
 0x124   :  { %v296_v54 = vpop.eup %295 }
 0x125   :  { %246 = vmatmul.mubr.msk.f32.vlgmr.msra.gmra.mrb[0].mxu1 %vm141_vm2, %v296_v54 }
 0x1f8   :  { %v211_v56 = vpop.f32.mrb[0].mxu1 }
 0x1f9   :  { %v212_v57 = vadd.f32 %v211_v56, %v140_v55  ;;  %v247_v58 = vpop.f32.mrb[1].mxu1 }
 0x1fb   :  { %v231_v59 = vmul.f32 -1.442695, %v212_v57 }
 0x1fd   :  { %297 = vpow2.f32 %v231_v59 }
 0x207   :  { %v298_v60 = vpop.eup %297 }
 0x208   :  { %v218_v61 = vadd.f32 1.0, %v298_v60 }
 0x20a   :  { %299 = vrcp.f32 %v218_v61 }
 0x214   :  { %v300_v62 = vpop.eup %299 }
 0x215   :  { %222 = vst.msk [vmem:[%s455_s5] sm:$0xff] %vm221_vm3, %v300_v62 }

</bundles_post_ra>
